<compile_context>
chip_gen: v5e
topology: v5e:2x2
jax: 0.10.0
libtpu: 0.0.40
codegen_flags: <defaults>
</compile_context>

<pallas_src>
import functools

import jax
import jax.numpy as jnp
from jax import lax
from jax.experimental import pallas as pl
from jax.experimental.pallas import tpu as pltpu


def _pick_tile(n, prefer=256):
    """Largest tile in {prefer, 128, 64, 32, 16, 8} dividing n, else n itself."""
    for t in (prefer, 128, 64, 32, 16, 8):
        if t <= n and n % t == 0:
            return t
    return n  # e.g. N = 197: a single full-sequence tile (still correct).


# ----------------------------------------------------------------------------
# Kernel 1: fused QKV projection  (M, D) @ (D, 3D) + bias  ->  q, k, v
# ----------------------------------------------------------------------------
def _qkv_proj_kernel(x_ref, w_ref, b_ref, q_ref, k_ref, v_ref, *, scale):
    # x_ref: (tm, D) bf16 input tile
    # w_ref: (D, 3D) bf16 fused QKV weight (constant block index -> never refetched)
    # b_ref: (1, 3D) f32 bias
    # q_ref/k_ref/v_ref: (tm, D) bf16 output tiles
    D = q_ref.shape[1]
    # One wide MXU matmul, bf16 operands, f32 accumulation; bias added in f32.
    qkv = jnp.dot(x_ref[...], w_ref[...],
                  preferred_element_type=jnp.float32) + b_ref[...]
    # Fold the softmax scale into q here: replaces a (tq, N) VALU pass per
    # attention grid step with a (tm, D) pass done once.
    q_ref[...] = (qkv[:, :D] * scale).astype(q_ref.dtype)
    k_ref[...] = qkv[:, D:2 * D].astype(k_ref.dtype)
    v_ref[...] = qkv[:, 2 * D:].astype(v_ref.dtype)


# ----------------------------------------------------------------------------
# Kernel 2: softmax attention on a (tq, D) query tile against full keys/values
# ----------------------------------------------------------------------------
def _attention_kernel(q_ref, k_ref, v_ref, o_ref):
    q = q_ref[0]          # (tq, D) bf16, already scaled by D**-0.5
    k = k_ref[0]          # (N, D)  bf16
    v = v_ref[0]          # (N, D)  bf16

    # Scores: contract last dims of q and k (NT form) -> (tq, N) f32; avoids a
    # per-step XLU transpose of k.
    scores = lax.dot_general(
        q, k,
        dimension_numbers=(((1,), (1,)), ((), ())),
        preferred_element_type=jnp.float32)

    # Numerically-stable softmax; all statistics in f32.  Exact reciprocal
    # (approx=False) keeps parity with the f32 PyTorch softmax while staying
    # off the VALU critical path.
    scores = scores - jnp.max(scores, axis=-1, keepdims=True)
    p = jnp.exp(scores)
    p = p * pl.reciprocal(jnp.sum(p, axis=-1, keepdims=True), approx=False)

    # PV matmul: bf16 operands, f32 accumulation.
    out = jnp.dot(p.astype(v.dtype), v, preferred_element_type=jnp.float32)
    o_ref[0] = out.astype(o_ref.dtype)


# ----------------------------------------------------------------------------
# Wrapper
# ----------------------------------------------------------------------------
def attention_forward(x, w_qkv, b_qkv, *, compute_dtype=jnp.bfloat16):
    """x: (B, N, D) f32.  w_qkv: (D, 3D).  b_qkv: (3D,).  Returns (B, N, D)."""
    B, N, D = x.shape
    scale = float(D) ** -0.5
    M = B * N

    tm = _pick_tile(M)          # projection row tile
    tq = _pick_tile(N)          # query tile (256 on v6e/v7x; 128 fills v5e MXU)

    itemsize = jnp.dtype(compute_dtype).itemsize
    x2 = x.reshape(M, D).astype(compute_dtype)
    w = w_qkv.astype(compute_dtype)
    b = b_qkv.reshape(1, 3 * D).astype(jnp.float32)

    # --- fused QKV projection -> q / k / v in HBM (compute_dtype) ---
    proj_resident = (2 * tm * D * itemsize          # x tile (double-buffered)
                     + 2 * D * 3 * D * itemsize     # weight
                     + 2 * 3 * D * 4                # bias
                     + 2 * 3 * tm * D * itemsize    # q/k/v output tiles
                     + tm * 3 * D * 4)              # f32 qkv accumulator value
    proj_vmem = int(min(max(proj_resident * 2, 32 << 20), 60 << 20))

    q, k, v = pl.pallas_call(
        functools.partial(_qkv_proj_kernel, scale=scale),
        out_shape=tuple(jax.ShapeDtypeStruct((M, D), compute_dtype)
                        for _ in range(3)),
        grid_spec=pltpu.PrefetchScalarGridSpec(
            num_scalar_prefetch=0,
            grid=(M // tm,),
            in_specs=[
                pl.BlockSpec((tm, D), lambda i: (i, 0)),        # x rows
                pl.BlockSpec((D, 3 * D), lambda i: (0, 0)),     # fused weight
                pl.BlockSpec((1, 3 * D), lambda i: (0, 0)),     # bias
            ],
            out_specs=tuple(pl.BlockSpec((tm, D), lambda i: (i, 0))
                            for _ in range(3)),
        ),
        compiler_params=pltpu.CompilerParams(
            dimension_semantics=("parallel",),
            vmem_limit_bytes=proj_vmem),
    )(x2, w, b)

    q = q.reshape(B, N, D)
    k = k.reshape(B, N, D)
    v = v.reshape(B, N, D)

    # --- softmax attention; both grid axes megacore-parallel ---
    attn_resident = (2 * tq * D * itemsize          # q tile
                     + 2 * 2 * N * D * itemsize     # k + v (full sequence)
                     + 2 * tq * D * 4               # output tile
                     + 3 * tq * N * 4)              # scores / p f32 temporaries
    attn_vmem = int(min(max(attn_resident * 2, 32 << 20), 60 << 20))

    out = pl.pallas_call(
        _attention_kernel,
        out_shape=jax.ShapeDtypeStruct((B, N, D), x.dtype),
        grid_spec=pltpu.PrefetchScalarGridSpec(
            num_scalar_prefetch=0,
            grid=(B, N // tq),
            in_specs=[
                pl.BlockSpec((1, tq, D), lambda bi, qi: (bi, qi, 0)),   # q tile
                pl.BlockSpec((1, N, D), lambda bi, qi: (bi, 0, 0)),     # full k
                pl.BlockSpec((1, N, D), lambda bi, qi: (bi, 0, 0)),     # full v
            ],
            out_specs=pl.BlockSpec((1, tq, D), lambda bi, qi: (bi, qi, 0)),
        ),
        compiler_params=pltpu.CompilerParams(
            dimension_semantics=("parallel", "parallel"),
            vmem_limit_bytes=attn_vmem),
    )(q, k, v)
    return out


def attention_reference(x, w_qkv, b_qkv):
    """Plain-JAX f32 reference matching the PyTorch forward."""
    D = x.shape[-1]
    qkv = jnp.einsum("bnd,de->bne", x, w_qkv) + b_qkv
    q, k, v = jnp.split(qkv, 3, axis=-1)
    atten = jnp.einsum("bnd,bmd->bnm", q, k) * (D ** -0.5)
    atten = jax.nn.softmax(atten, axis=-1)
    return jnp.einsum("bnm,bmd->bnd", atten, v)


if __name__ == "__main__":
    B, N, D = 2, 8, 32  # batch, tokens, embed_dim

    key = jax.random.PRNGKey(0)
    kx, kw, kb = jax.random.split(key, 3)

    x = jax.random.normal(kx, (B, N, D), dtype=jnp.float32)
    # Deterministic synthetic parameters for nn.Linear(D, 3D):
    w_qkv = jax.random.normal(kw, (D, 3 * D), dtype=jnp.float32) * (D ** -0.5)
    b_qkv = jax.random.normal(kb, (3 * D,), dtype=jnp.float32) * 0.01

    out = jax.block_until_ready(attention_forward(x, w_qkv, b_qkv))
    ref = attention_reference(x, w_qkv, b_qkv)

    assert out.shape == (B, N, D)
    # Tolerance sized for bf16 MXU operands (accumulation, bias add, softmax
    # statistics and the reciprocal are all exact f32).
    max_err = float(jnp.max(jnp.abs(out - ref)))
    assert jnp.allclose(out, ref, atol=5e-2, rtol=5e-2), max_err

    print("KERNEL_OK")
</pallas_src>

<mosaic_0001>
module attributes {stable_mosaic.version = 11 : i64} {
  func.func @_qkv_proj_kernel(%arg0: i32, %arg1: memref<16x32xbf16, #tpu.memory_space<vmem>>, %arg2: memref<32x96xbf16, #tpu.memory_space<vmem>>, %arg3: memref<1x96xf32, #tpu.memory_space<vmem>>, %arg4: memref<16x32xbf16, #tpu.memory_space<vmem>>, %arg5: memref<16x32xbf16, #tpu.memory_space<vmem>>, %arg6: memref<16x32xbf16, #tpu.memory_space<vmem>>) attributes {dimension_semantics = [#tpu.dimension_semantics<parallel>], iteration_bounds = array<i64: 1>, scalar_prefetch = 0 : i64, scratch_operands = 0 : i64, tpu.core_type = #tpu.core_type<tc>, window_params = [{transform_indices = @transform_0, window_bounds = array<i64: 16, 32>}, {pipeline_mode = #tpu.pipeline_mode<synchronous>, transform_indices = @transform_1, window_bounds = array<i64: 32, 96>}, {pipeline_mode = #tpu.pipeline_mode<synchronous>, transform_indices = @transform_2, window_bounds = array<i64: 1, 96>}, {transform_indices = @transform_3, window_bounds = array<i64: 16, 32>}, {transform_indices = @transform_4, window_bounds = array<i64: 16, 32>}, {transform_indices = @transform_5, window_bounds = array<i64: 16, 32>}]} {
    %c0 = arith.constant 0 : index
    %c0_0 = arith.constant 0 : index
    %0 = vector.load %arg1[%c0, %c0_0] : memref<16x32xbf16, #tpu.memory_space<vmem>>, vector<16x32xbf16>
    %c0_1 = arith.constant 0 : index
    %c0_2 = arith.constant 0 : index
    %1 = vector.load %arg2[%c0_1, %c0_2] : memref<32x96xbf16, #tpu.memory_space<vmem>>, vector<32x96xbf16>
    %cst = arith.constant dense<0.000000e+00> : vector<16x96xf32>
    %2 = tpu.matmul %0, %1, %cst {dimension_numbers = #tpu.dot_dimension_numbers<[1], [0], [0], [1], [0, 0, 1, 1], [], []>} : vector<16x32xbf16>, vector<32x96xbf16>, vector<16x96xf32> -> vector<16x96xf32>
    %c0_3 = arith.constant 0 : index
    %c0_4 = arith.constant 0 : index
    %3 = vector.load %arg3[%c0_3, %c0_4] : memref<1x96xf32, #tpu.memory_space<vmem>>, vector<1x96xf32>
    %4 = vector.broadcast %3 : vector<1x96xf32> to vector<16x96xf32>
    %5 = arith.addf %2, %4 : vector<16x96xf32>
    %6 = vector.extract_strided_slice %5 {offsets = [0, 0], sizes = [16, 32], strides = [1, 1]} : vector<16x96xf32> to vector<16x32xf32>
    %cst_5 = arith.constant 0.176776692 : f32
    %7 = vector.broadcast %cst_5 : f32 to vector<16x32xf32>
    %8 = arith.mulf %6, %7 : vector<16x32xf32>
    %9 = arith.truncf %8 : vector<16x32xf32> to vector<16x32xbf16>
    %c0_6 = arith.constant 0 : index
    %c0_7 = arith.constant 0 : index
    %10 = vector.load %arg4[%c0_6, %c0_7] : memref<16x32xbf16, #tpu.memory_space<vmem>>, vector<16x32xbf16>
    tpu.vector_store %arg4[%c0_6, %c0_7], %9 {strides = array<i32>} : memref<16x32xbf16, #tpu.memory_space<vmem>>, vector<16x32xbf16>,
    %11 = vector.extract_strided_slice %5 {offsets = [0, 32], sizes = [16, 32], strides = [1, 1]} : vector<16x96xf32> to vector<16x32xf32>
    %12 = arith.truncf %11 : vector<16x32xf32> to vector<16x32xbf16>
    %c0_8 = arith.constant 0 : index
    %c0_9 = arith.constant 0 : index
    %13 = vector.load %arg5[%c0_8, %c0_9] : memref<16x32xbf16, #tpu.memory_space<vmem>>, vector<16x32xbf16>
    tpu.vector_store %arg5[%c0_8, %c0_9], %12 {strides = array<i32>} : memref<16x32xbf16, #tpu.memory_space<vmem>>, vector<16x32xbf16>,
    %14 = vector.extract_strided_slice %5 {offsets = [0, 64], sizes = [16, 32], strides = [1, 1]} : vector<16x96xf32> to vector<16x32xf32>
    %15 = arith.truncf %14 : vector<16x32xf32> to vector<16x32xbf16>
    %c0_10 = arith.constant 0 : index
    %c0_11 = arith.constant 0 : index
    %16 = vector.load %arg6[%c0_10, %c0_11] : memref<16x32xbf16, #tpu.memory_space<vmem>>, vector<16x32xbf16>
    tpu.vector_store %arg6[%c0_10, %c0_11], %15 {strides = array<i32>} : memref<16x32xbf16, #tpu.memory_space<vmem>>, vector<16x32xbf16>,
    return
  }
  func.func @transform_0(%arg0: i32) -> (i32, i32) {
    %c0_i32 = arith.constant 0 : i32
    %c0_i32_0 = arith.constant 0 : i32
    return %arg0, %c0_i32 : i32, i32
  }
  func.func @transform_1(%arg0: i32) -> (i32, i32) {
    %c0_i32 = arith.constant 0 : i32
    %c0_i32_0 = arith.constant 0 : i32
    %c0_i32_1 = arith.constant 0 : i32
    return %c0_i32, %c0_i32_0 : i32, i32
  }
  func.func @transform_2(%arg0: i32) -> (i32, i32) {
    %c0_i32 = arith.constant 0 : i32
    %c0_i32_0 = arith.constant 0 : i32
    %c0_i32_1 = arith.constant 0 : i32
    return %c0_i32, %c0_i32_0 : i32, i32
  }
  func.func @transform_3(%arg0: i32) -> (i32, i32) {
    %c0_i32 = arith.constant 0 : i32
    %c0_i32_0 = arith.constant 0 : i32
    return %arg0, %c0_i32 : i32, i32
  }
  func.func @transform_4(%arg0: i32) -> (i32, i32) {
    %c0_i32 = arith.constant 0 : i32
    %c0_i32_0 = arith.constant 0 : i32
    return %arg0, %c0_i32 : i32, i32
  }
  func.func @transform_5(%arg0: i32) -> (i32, i32) {
    %c0_i32 = arith.constant 0 : i32
    %c0_i32_0 = arith.constant 0 : i32
    return %arg0, %c0_i32 : i32, i32
  }
}

</mosaic_0001>

<bundles_post_ra>
// kernel: tpu_custom_call.1
= control target key start
LH: loop header
LB: loop body
LE: loop exit
PB: predicated region body
PF: predicated region fallthrough
CT: control target
= control target key end

     0   :  { %11 = vsyncpa [#allocation3], 0  ;;  %s411_s0 = inlined_call_operand.hbm [shape: bf16[16,32], index: 0, kind: input, shape index: {}]   ;;  %s412_s1 = inlined_call_operand.hbm [shape: bf16[32,96], index: 1, kind: input, shape index: {}]   ;;  %s413_s2 = inlined_call_operand.vmem [shape: f32[1,96], index: 2, kind: input, shape index: {}]   ;;  %s414_s3 = inlined_call_operand.hbm [shape: bf16[16,32], index: 3, kind: output, shape index: {0}]   ;;  %s415_s4 = inlined_call_operand.hbm [shape: bf16[16,32], index: 4, kind: output, shape index: {1}]   ;;  %s416_s5 = inlined_call_operand.hbm [shape: bf16[16,32], index: 5, kind: output, shape index: {2}]  }
   0x1   :  { %12 = vsyncpa [#allocation6], 0 }
   0x2   :  { %13 = vsyncpa [#allocation4], 0 }
   0x3   :  { %14 = vsyncpa [#allocation9], 0  ;;  %s19_s20 = sshll.u32 %s411_s0, 4  ;;  %s332_s21 = smov [#allocation2]   ;;  %s20_s20 = int_to_ptr.hbm [resolvable:$true] %s19_s20 }
   0x4   :  { %s21_s22 = sshll.u32 %s332_s21, 4  ;;  %s32_s25 = sshll.u32 %s412_s1, 4  ;;  %s22_s22 = int_to_ptr.vmem [resolvable:$true] %s21_s22  ;;  %s33_s25 = int_to_ptr.hbm [resolvable:$true] %s32_s25 }
   0x5   :  { %s333_s26 = smov 64   ;;  %s334_s27 = smov 4  }
   0x6   :  { %27 = dma.hbm_to_vmem [thread:$0]  %s20_s20, 128, %s22_s22, [#allocation3], %s333_s26, %s333_s26, %s334_s27  }
   0x7   :  { %s335_s28 = smov [#allocation5]  }
   0x8   :  { %s34_s29 = sshll.u32 %s335_s28, 4  ;;  %s35_s29 = int_to_ptr.vmem [resolvable:$true] %s34_s29 }
   0x9   :  { %40 = dma.hbm_to_vmem [thread:$0]  %s33_s25, 256, %s35_s29, [#allocation6], %s333_s26, %s333_s26, %s334_s27  }
   0xa   :  { %324 = dma.done.wait [#allocation3], 128  }
   0xb   :  { %325 = vsyncadd [#allocation3], 4294967168 }
   0xc   :  { %326 = dma.done.wait [#allocation6], 256  }
   0xd   :  { %327 = vsyncadd [#allocation6], 4294967040  ;;  %v194_v0 = vld [vmem:[#allocation5 + $0x8] sm:$0xff]  ;;  %v193_v1 = vld [vmem:[#allocation5] sm:$0xff]  ;;  %vm79_vm0 = vcmask 261120   ;;  %vm101_vm1 = vcmask 257024  }
   0xe   :  { %89 = vmatpush.bf16.msra.mxu0 %v194_v0  ;;  %v192_v2 = vld [vmem:[#allocation2] sm:$0xff]  ;;  %s336_s30 = smov 96   ;;  %s337_s6 = smov [#allocation7]  }
   0xf   :  { %v203_v3 = vld [vmem:[%s413_s2] ss:$0 sm:$0xff]  ;;  %s128_s7 = sshll.u32 %s337_s6, 4  ;;  %s130_s2 = sshll.u32 %s414_s3, 4  ;;  %s129_s7 = int_to_ptr.vmem [resolvable:$true] %s128_s7  ;;  %s131_s2 = int_to_ptr.hbm [resolvable:$true] %s130_s2 }
  0x10   :  { %s338_s3 = smov [#allocation8]   ;;  %s143_s13 = sshll.u32 %s415_s4, 4  ;;  %s144_s13 = int_to_ptr.hbm [resolvable:$true] %s143_s13 }
  0x11   :  { %s141_s10 = sshll.u32 %s338_s3, 4  ;;  %s339_s14 = smov [#allocation10]   ;;  %s142_s10 = int_to_ptr.vmem [resolvable:$true] %s141_s10 }
  0x12   :  { %90 = vmatpush.bf16.msra.mxu0 %v193_v1  ;;  %s154_s15 = sshll.u32 %s339_s14, 4  ;;  %s156_s18 = sshll.u32 %s416_s5, 4  ;;  %s155_s15 = int_to_ptr.vmem [resolvable:$true] %s154_s15  ;;  %s157_s18 = int_to_ptr.hbm [resolvable:$true] %s156_s18 }
  0x15   :  { %191 = vmatmul.msk.bf16.vlgmr.msra.gmra.mxu0 %vm79_vm0, %v192_v2 }
  0x92   :  { %v92_v4 = vpop.f32.mrf.mxu0 }
  0x93   :  { %v93_v5 = vadd.f32 %v203_v3, %v92_v4 }
  0x95   :  { %v97_v6 = vmul.f32 0.17677669, %v93_v5  ;;  %v104_v7 = vpack.c.bf16 %v93_v5, %v93_v5 }
  0x97   :  { %v99_v8 = vpack.c.bf16 %v97_v6, %v97_v6  ;;  %116 = vrot.lane.b32.xlu1 %v104_v7, %s333_s26  ;;  %108 = vrot.lane.b32.xlu0 %v104_v7, %s336_s30 }
  0x99   :  { %102 = vst.msk [vmem:[#allocation7] sm:$0xf] %vm101_vm1, %v99_v8 }
  0x9a   :  { %v94_v9 = vpop.f32.mrf.mxu0 }
  0x9b   :  { %v95_v10 = vadd.f32 %v203_v3, %v94_v9 }
  0x9d   :  { %v98_v11 = vmul.f32 0.17677669, %v95_v10  ;;  %v105_v12 = vpack.c.bf16 %v95_v10, %v95_v10 }
  0x9f   :  { %v100_v13 = vpack.c.bf16 %v98_v11, %v98_v11  ;;  %118 = vrot.lane.b32.xlu1 %v105_v12, %s333_s26  ;;  %110 = vrot.lane.b32.xlu0 %v105_v12, %s336_s30 }
  0xa1   :  { %103 = vst.msk [vmem:[#allocation7 + $0x4] sm:$0xf] %vm101_vm1, %v100_v13 }
  0xa2   :  { %136 = dma.vmem_to_hbm [thread:$0]  %s129_s7, 128, %s131_s2, [#allocation4], %s333_s26, %s333_s26, %s334_s27  }
 0x109   :  { %v117_v14 = vpop.permute.xlu1 %116  ;;  %v109_v15 = vpop.permute.xlu0 %108 }
 0x10a   :  { %122 = vst.msk [vmem:[#allocation10] sm:$0xf] %vm101_vm1, %v117_v14 }
 0x10b   :  { %114 = vst.msk [vmem:[#allocation8] sm:$0xf] %vm101_vm1, %v109_v15 }
 0x111   :  { %v119_v16 = vpop.permute.xlu1 %118  ;;  %v111_v17 = vpop.permute.xlu0 %110 }
 0x112   :  { %123 = vst.msk [vmem:[#allocation10 + $0x4] sm:$0xf] %vm101_vm1, %v119_v16 }
 0x113   :  { %115 = vst.msk [vmem:[#allocation8 + $0x4] sm:$0xf] %vm101_vm1, %v111_v17 }
 0x114   :  { %149 = dma.vmem_to_hbm [thread:$0]  %s142_s10, 128, %s144_s13, [#allocation9], %s333_s26, %s333_s26, %s334_s27  }
 0x115   :  { %162 = dma.vmem_to_hbm [thread:$0]  %s155_s15, 128, %s157_s18, [#allocation9], %s333_s26, %s333_s26, %s334_s27  }
 0x116   :  { %328 = dma.done.wait [#allocation4], 128  }
 0x117   :  { %329 = vsyncadd [#allocation4], 4294967168 }
 0x118   :  { %330 = dma.done.wait [#allocation9], 256  }
 0x119   :  { %331 = vsyncadd [#allocation9], 4294967040 }
 0x11a   :  { %175 = vsyncpa [#allocation3], 1 }
 0x11b   :  { %176 = vsyncpa [#allocation6], 1 }
 0x11c   :  { %177 = vsyncpa [#allocation4], 1 }
 0x11d   :  { %178 = vsyncpa [#allocation9], 1 }

</bundles_post_ra>
